<compile_context>
chip_gen: v7x
topology: tpu7x:2x2x1
jax: 0.10.0
libtpu: 0.0.40
codegen_flags: <defaults>
</compile_context>

<pallas_src>
import functools
import math

import jax
import jax.numpy as jnp
from jax.experimental import pallas as pl
from jax.experimental.pallas import tpu as pltpu


# ---------------------------------------------------------------------------
# Pallas kernel: fully fused BasicBlock for one image
# ---------------------------------------------------------------------------

def _basic_block_kernel(x_ref, w1_ref, b1_ref, w2_ref, b2_ref, o_ref,
                        col1_ref, y1p_ref, col2_ref, *, H, W, Cin, C1):
    """Fused conv3x3+BN+ReLU, conv3x3+BN, residual add, ReLU (one image).

    x_ref   : (1, Cin, (H+2)*W + 2)  H-halo-padded, flattened, +/-1 guard lane
    w1_ref  : (C1, 9*Cin)            conv1 taps, BN1 scale folded in
    b1_ref  : (C1, 1)                folded BN1 shift
    w2_ref  : (C2, 9*C1)             conv2 taps, BN2 scale folded in
    b2_ref  : (C2, 1)                folded BN2 shift
    o_ref   : (1, C2, H*W)
    col1_ref: (9*Cin, H*W)  VMEM scratch, im2col for conv1
    y1p_ref : (C1, (H+2)*W + 2) VMEM scratch, re-padded conv1 output
    col2_ref: (9*C1, H*W)   VMEM scratch, im2col for conv2
    """
    HW = H * W

    xp = x_ref[0]                                     # (Cin, Lp)

    # Per-lane masks killing the W-border wrap of the left / right taps.
    col = jax.lax.broadcasted_iota(jnp.int32, (1, HW), 1) % W
    not_left = (col != 0).astype(jnp.float32)         # kx == 0 taps
    not_right = (col != W - 1).astype(jnp.float32)    # kx == 2 taps

    def fill_im2col(src, dst_ref, c):
        """src: (c, (H+2)*W + 2) padded/flattened; dst_ref: (9*c, H*W)."""
        for ky in range(3):
            for kx in range(3):
                start = ky * W + kx                   # static lane offset
                slab = src[:, start:start + HW]       # (c, H*W)
                if kx == 0:
                    slab = slab * not_left
                elif kx == 2:
                    slab = slab * not_right
                k = ky * 3 + kx
                dst_ref[k * c:(k + 1) * c, :] = slab  # sublane-aligned store

    # conv1 (BN1 scale folded into weights) as a single MXU matmul.
    fill_im2col(xp, col1_ref, Cin)
    y1 = jnp.dot(w1_ref[...], col1_ref[...],
                 preferred_element_type=jnp.float32)  # (C1, H*W)
    y1 = jnp.maximum(y1 + b1_ref[...], 0.0)

    # Re-pad y1 (zero halos + guard lanes) so conv2 taps are contiguous windows.
    y1p_ref[...] = jnp.zeros_like(y1p_ref)
    y1p_ref[:, W + 1:W + 1 + HW] = y1

    # conv2 (BN2 scale folded) + shift + residual add + relu.
    fill_im2col(y1p_ref[...], col2_ref, C1)
    y2 = jnp.dot(w2_ref[...], col2_ref[...],
                 preferred_element_type=jnp.float32)  # (C2, H*W)

    identity = xp[:, W + 1:W + 1 + HW]                # original x, interior
    o_ref[0] = jnp.maximum(y2 + b2_ref[...] + identity, 0.0).astype(o_ref.dtype)


# ---------------------------------------------------------------------------
# Wrapper
# ---------------------------------------------------------------------------

def basic_block_forward(x, params, eps=1e-5):
    """x: (N, C, H, W) NCHW float32 -> (N, C, H, W) NCHW float32."""
    N, Cin, H, W = x.shape
    C1 = params["w1"].shape[0]
    C2 = params["w2"].shape[0]
    assert Cin == C2, "identity path needs inplanes == planes (downsample=None)"
    HW = H * W
    Lp = (H + 2) * W + 2

    # Fold eval-mode BatchNorm into the conv weights (scale) + a shift.
    s1 = params["bn1_gamma"] * jax.lax.rsqrt(params["bn1_var"] + eps)
    b1 = (params["bn1_beta"] - params["bn1_mean"] * s1).reshape(C1, 1)
    s2 = params["bn2_gamma"] * jax.lax.rsqrt(params["bn2_var"] + eps)
    b2 = (params["bn2_beta"] - params["bn2_mean"] * s2).reshape(C2, 1)

    # (Cout, Cin, ky, kx) -> (Cout, ky, kx, Cin) -> (Cout, 9*Cin); row k of the
    # im2col slab is tap k = ky*3 + kx for input channel k % Cin.
    w1_2d = jnp.transpose(params["w1"], (0, 2, 3, 1)).reshape(C1, 9 * Cin)
    w1_2d = w1_2d * s1[:, None]
    w2_2d = jnp.transpose(params["w2"], (0, 2, 3, 1)).reshape(C2, 9 * C1)
    w2_2d = w2_2d * s2[:, None]

    # Pad H with one zero halo row on each side, flatten spatial, then add a
    # +/-1 guard lane so every 3x3 tap is a contiguous lane window of length
    # H*W (W-border wraps are masked inside the kernel).
    xp = jnp.pad(x, ((0, 0), (0, 0), (1, 1), (0, 0))).reshape(N, Cin, (H + 2) * W)
    xp = jnp.pad(xp, ((0, 0), (0, 0), (1, 1)))        # (N, Cin, Lp)

    flops = 2 * N * HW * 9 * (Cin * C1 + C1 * C2)
    bytes_accessed = 4 * (N * Cin * Lp + N * C2 * HW
                          + 9 * (C1 * Cin + C2 * C1) + (C1 + C2))

    kernel = functools.partial(_basic_block_kernel, H=H, W=W, Cin=Cin, C1=C1)
    out = pl.pallas_call(
        kernel,
        grid=(N,),
        in_specs=[
            pl.BlockSpec((1, Cin, Lp), lambda n: (n, 0, 0)),   # padded x
            pl.BlockSpec((C1, 9 * Cin), lambda n: (0, 0)),     # conv1 (BN-folded)
            pl.BlockSpec((C1, 1), lambda n: (0, 0)),           # bn1 shift
            pl.BlockSpec((C2, 9 * C1), lambda n: (0, 0)),      # conv2 (BN-folded)
            pl.BlockSpec((C2, 1), lambda n: (0, 0)),           # bn2 shift
        ],
        out_specs=pl.BlockSpec((1, C2, HW), lambda n: (n, 0, 0)),
        out_shape=jax.ShapeDtypeStruct((N, C2, HW), jnp.float32),
        scratch_shapes=[
            pltpu.VMEM((9 * Cin, HW), jnp.float32),            # im2col conv1
            pltpu.VMEM((C1, Lp), jnp.float32),                 # re-padded y1
            pltpu.VMEM((9 * C1, HW), jnp.float32),             # im2col conv2
        ],
        compiler_params=pltpu.CompilerParams(
            dimension_semantics=("parallel",),
            vmem_limit_bytes=32 * 1024 * 1024),
        cost_estimate=pl.CostEstimate(
            flops=flops, transcendentals=0, bytes_accessed=bytes_accessed),
    )(xp, w1_2d, b1, w2_2d, b2)

    return out.reshape(N, C2, H, W)


# ---------------------------------------------------------------------------
# Parameters + pure-JAX reference (for a correctness check)
# ---------------------------------------------------------------------------

def init_basic_block_params(key, inplanes, planes):
    ks = jax.random.split(key, 10)

    def conv_w(k, cout, cin):
        std = math.sqrt(2.0 / (cin * 9))
        w = std * jax.random.normal(k, (cout, cin, 3, 3), jnp.float32)
        # keep weights exactly bf16-representable (stable vs MXU bf16 passes)
        return w.astype(jnp.bfloat16).astype(jnp.float32)

    return {
        "w1": conv_w(ks[0], planes, inplanes),
        "w2": conv_w(ks[1], planes, planes),
        "bn1_gamma": 1.0 + 0.1 * jax.random.normal(ks[2], (planes,), jnp.float32),
        "bn1_beta": 0.1 * jax.random.normal(ks[3], (planes,), jnp.float32),
        "bn1_mean": 0.1 * jax.random.normal(ks[4], (planes,), jnp.float32),
        "bn1_var": jax.random.uniform(ks[5], (planes,), jnp.float32, 0.5, 1.5),
        "bn2_gamma": 1.0 + 0.1 * jax.random.normal(ks[6], (planes,), jnp.float32),
        "bn2_beta": 0.1 * jax.random.normal(ks[7], (planes,), jnp.float32),
        "bn2_mean": 0.1 * jax.random.normal(ks[8], (planes,), jnp.float32),
        "bn2_var": jax.random.uniform(ks[9], (planes,), jnp.float32, 0.5, 1.5),
    }


def basic_block_ref(x, params, eps=1e-5):
    def conv(v, w):
        return jax.lax.conv_general_dilated(
            v, w, window_strides=(1, 1), padding=((1, 1), (1, 1)),
            dimension_numbers=("NCHW", "OIHW", "NCHW"))

    def bn(v, g, b, m, var):
        inv = jax.lax.rsqrt(var + eps)
        return ((v - m[None, :, None, None]) * (g * inv)[None, :, None, None]
                + b[None, :, None, None])

    out = conv(x, params["w1"])
    out = jnp.maximum(bn(out, params["bn1_gamma"], params["bn1_beta"],
                         params["bn1_mean"], params["bn1_var"]), 0.0)
    out = conv(out, params["w2"])
    out = bn(out, params["bn2_gamma"], params["bn2_beta"],
             params["bn2_mean"], params["bn2_var"])
    return jnp.maximum(out + x, 0.0)


# ---------------------------------------------------------------------------
# Main
# ---------------------------------------------------------------------------

if __name__ == "__main__":
    key = jax.random.PRNGKey(0)
    k_param, k_input = jax.random.split(key)

    # BasicBlock(inplanes=8, planes=8, stride=1, downsample=None)
    inplanes = planes = 8
    N, H, W = 2, 16, 16
    params = init_basic_block_params(k_param, inplanes, planes)

    x = jax.random.normal(k_input, (N, inplanes, H, W), jnp.float32)
    # Keep inputs exactly bf16-representable so MXU bf16 passes in the XLA
    # reference and the Pallas kernel stay close.
    x = x.astype(jnp.bfloat16).astype(jnp.float32)

    fwd = jax.jit(basic_block_forward)
    y = jax.block_until_ready(fwd(x, params))

    assert y.shape == (N, planes, H, W), y.shape
    assert bool(jnp.all(jnp.isfinite(y)))

    y_ref = basic_block_ref(x, params)
    max_err = float(jnp.max(jnp.abs(y - y_ref)))
    assert max_err < 5e-2, f"max abs err vs reference: {max_err}"
    print("KERNEL_OK")
</pallas_src>

<mosaic_0001>
module attributes {stable_mosaic.version = 11 : i64} {
  func.func @_basic_block_kernel(%arg0: i32, %arg1: memref<1x8x290xf32, #tpu.memory_space<vmem>>, %arg2: memref<8x72xf32, #tpu.memory_space<vmem>>, %arg3: memref<8x1xf32, #tpu.memory_space<vmem>>, %arg4: memref<8x72xf32, #tpu.memory_space<vmem>>, %arg5: memref<8x1xf32, #tpu.memory_space<vmem>>, %arg6: memref<1x8x256xf32, #tpu.memory_space<vmem>>, %arg7: memref<72x256xf32, #tpu.memory_space<vmem>>, %arg8: memref<8x290xf32, #tpu.memory_space<vmem>>, %arg9: memref<72x256xf32, #tpu.memory_space<vmem>>) attributes {dimension_semantics = [#tpu.dimension_semantics<parallel>], iteration_bounds = array<i64: 2>, scalar_prefetch = 0 : i64, scratch_operands = 3 : i64, tpu.core_type = #tpu.core_type<tc>, window_params = [{transform_indices = @transform_0, window_bounds = array<i64: 1, 8, 290>}, {pipeline_mode = #tpu.pipeline_mode<synchronous>, transform_indices = @transform_1, window_bounds = array<i64: 8, 72>}, {pipeline_mode = #tpu.pipeline_mode<synchronous>, transform_indices = @transform_2, window_bounds = array<i64: 8, 1>}, {pipeline_mode = #tpu.pipeline_mode<synchronous>, transform_indices = @transform_3, window_bounds = array<i64: 8, 72>}, {pipeline_mode = #tpu.pipeline_mode<synchronous>, transform_indices = @transform_4, window_bounds = array<i64: 8, 1>}, {transform_indices = @transform_5, window_bounds = array<i64: 1, 8, 256>}]} {
    %c0 = arith.constant 0 : index
    %c0_0 = arith.constant 0 : index
    %c0_1 = arith.constant 0 : index
    %0 = vector.load %arg1[%c0, %c0_0, %c0_1] : memref<1x8x290xf32, #tpu.memory_space<vmem>>, vector<1x8x290xf32>
    %1 = vector.shape_cast %0 : vector<1x8x290xf32> to vector<8x290xf32>
    %2 = tpu.iota {dimensions = array<i32: 1>} : vector<1x256xi32>
    %c16_i32 = arith.constant 16 : i32
    %c0_i32 = arith.constant 0 : i32
    %3 = arith.cmpi eq, %c16_i32, %c0_i32 : i32
    %c1_i32 = arith.constant 1 : i32
    %4 = arith.select %3, %c1_i32, %c16_i32 : i32
    %5 = vector.broadcast %4 : i32 to vector<1x256xi32>
    %6 = arith.remsi %2, %5 : vector<1x256xi32>
    %c0_i32_2 = arith.constant 0 : i32
    %7 = vector.broadcast %c0_i32_2 : i32 to vector<1x256xi32>
    %8 = arith.cmpi ne, %6, %7 : vector<1x256xi32>
    %c0_i32_3 = arith.constant 0 : i32
    %9 = vector.broadcast %c0_i32_3 : i32 to vector<1x256xi32>
    %10 = arith.cmpi slt, %6, %9 : vector<1x256xi32>
    %c0_i32_4 = arith.constant 0 : i32
    %11 = arith.cmpi slt, %4, %c0_i32_4 : i32
    %12 = vector.broadcast %11 : i1 to vector<1x256xi1>
    %13 = vector.broadcast %12 : vector<1x256xi1> to vector<1x256xi1>
    %14 = arith.xori %10, %13 : vector<1x256xi1>
    %15 = arith.andi %14, %8 : vector<1x256xi1>
    %16 = vector.broadcast %4 : i32 to vector<1x256xi32>
    %17 = arith.addi %6, %16 : vector<1x256xi32>
    %18 = arith.select %15, %17, %6 : vector<1x256xi1>, vector<1x256xi32>
    %c0_i32_5 = arith.constant 0 : i32
    %19 = vector.broadcast %c0_i32_5 : i32 to vector<1x256xi32>
    %20 = arith.cmpi ne, %18, %19 : vector<1x256xi32>
    %21 = arith.extui %20 : vector<1x256xi1> to vector<1x256xi32>
    %22 = arith.sitofp %21 : vector<1x256xi32> to vector<1x256xf32>
    %c15_i32 = arith.constant 15 : i32
    %23 = vector.broadcast %c15_i32 : i32 to vector<1x256xi32>
    %24 = arith.cmpi ne, %18, %23 : vector<1x256xi32>
    %25 = arith.extui %24 : vector<1x256xi1> to vector<1x256xi32>
    %26 = arith.sitofp %25 : vector<1x256xi32> to vector<1x256xf32>
    %27 = vector.extract_strided_slice %1 {offsets = [0, 0], sizes = [8, 256], strides = [1, 1]} : vector<8x290xf32> to vector<8x256xf32>
    %28 = vector.broadcast %22 : vector<1x256xf32> to vector<8x256xf32>
    %29 = arith.mulf %27, %28 : vector<8x256xf32>
    %c0_6 = arith.constant 0 : index
    %c0_7 = arith.constant 0 : index
    %30 = vector.load %arg7[%c0_6, %c0_7] : memref<72x256xf32, #tpu.memory_space<vmem>>, vector<8x256xf32>
    tpu.vector_store %arg7[%c0_6, %c0_7], %29 {strides = array<i32>} : memref<72x256xf32, #tpu.memory_space<vmem>>, vector<8x256xf32>,
    %31 = vector.extract_strided_slice %1 {offsets = [0, 1], sizes = [8, 256], strides = [1, 1]} : vector<8x290xf32> to vector<8x256xf32>
    %c8 = arith.constant 8 : index
    %c0_8 = arith.constant 0 : index
    %32 = vector.load %arg7[%c8, %c0_8] : memref<72x256xf32, #tpu.memory_space<vmem>>, vector<8x256xf32>
    tpu.vector_store %arg7[%c8, %c0_8], %31 {strides = array<i32>} : memref<72x256xf32, #tpu.memory_space<vmem>>, vector<8x256xf32>,
    %33 = vector.extract_strided_slice %1 {offsets = [0, 2], sizes = [8, 256], strides = [1, 1]} : vector<8x290xf32> to vector<8x256xf32>
    %34 = vector.broadcast %26 : vector<1x256xf32> to vector<8x256xf32>
    %35 = arith.mulf %33, %34 : vector<8x256xf32>
    %c16 = arith.constant 16 : index
    %c0_9 = arith.constant 0 : index
    %36 = vector.load %arg7[%c16, %c0_9] : memref<72x256xf32, #tpu.memory_space<vmem>>, vector<8x256xf32>
    tpu.vector_store %arg7[%c16, %c0_9], %35 {strides = array<i32>} : memref<72x256xf32, #tpu.memory_space<vmem>>, vector<8x256xf32>,
    %37 = vector.extract_strided_slice %1 {offsets = [0, 16], sizes = [8, 256], strides = [1, 1]} : vector<8x290xf32> to vector<8x256xf32>
    %38 = vector.broadcast %22 : vector<1x256xf32> to vector<8x256xf32>
    %39 = arith.mulf %37, %38 : vector<8x256xf32>
    %c24 = arith.constant 24 : index
    %c0_10 = arith.constant 0 : index
    %40 = vector.load %arg7[%c24, %c0_10] : memref<72x256xf32, #tpu.memory_space<vmem>>, vector<8x256xf32>
    tpu.vector_store %arg7[%c24, %c0_10], %39 {strides = array<i32>} : memref<72x256xf32, #tpu.memory_space<vmem>>, vector<8x256xf32>,
    %41 = vector.extract_strided_slice %1 {offsets = [0, 17], sizes = [8, 256], strides = [1, 1]} : vector<8x290xf32> to vector<8x256xf32>
    %c32 = arith.constant 32 : index
    %c0_11 = arith.constant 0 : index
    %42 = vector.load %arg7[%c32, %c0_11] : memref<72x256xf32, #tpu.memory_space<vmem>>, vector<8x256xf32>
    tpu.vector_store %arg7[%c32, %c0_11], %41 {strides = array<i32>} : memref<72x256xf32, #tpu.memory_space<vmem>>, vector<8x256xf32>,
    %43 = vector.extract_strided_slice %1 {offsets = [0, 18], sizes = [8, 256], strides = [1, 1]} : vector<8x290xf32> to vector<8x256xf32>
    %44 = vector.broadcast %26 : vector<1x256xf32> to vector<8x256xf32>
    %45 = arith.mulf %43, %44 : vector<8x256xf32>
    %c40 = arith.constant 40 : index
    %c0_12 = arith.constant 0 : index
    %46 = vector.load %arg7[%c40, %c0_12] : memref<72x256xf32, #tpu.memory_space<vmem>>, vector<8x256xf32>
    tpu.vector_store %arg7[%c40, %c0_12], %45 {strides = array<i32>} : memref<72x256xf32, #tpu.memory_space<vmem>>, vector<8x256xf32>,
    %47 = vector.extract_strided_slice %1 {offsets = [0, 32], sizes = [8, 256], strides = [1, 1]} : vector<8x290xf32> to vector<8x256xf32>
    %48 = vector.broadcast %22 : vector<1x256xf32> to vector<8x256xf32>
    %49 = arith.mulf %47, %48 : vector<8x256xf32>
    %c48 = arith.constant 48 : index
    %c0_13 = arith.constant 0 : index
    %50 = vector.load %arg7[%c48, %c0_13] : memref<72x256xf32, #tpu.memory_space<vmem>>, vector<8x256xf32>
    tpu.vector_store %arg7[%c48, %c0_13], %49 {strides = array<i32>} : memref<72x256xf32, #tpu.memory_space<vmem>>, vector<8x256xf32>,
    %51 = vector.extract_strided_slice %1 {offsets = [0, 33], sizes = [8, 256], strides = [1, 1]} : vector<8x290xf32> to vector<8x256xf32>
    %c56 = arith.constant 56 : index
    %c0_14 = arith.constant 0 : index
    %52 = vector.load %arg7[%c56, %c0_14] : memref<72x256xf32, #tpu.memory_space<vmem>>, vector<8x256xf32>
    tpu.vector_store %arg7[%c56, %c0_14], %51 {strides = array<i32>} : memref<72x256xf32, #tpu.memory_space<vmem>>, vector<8x256xf32>,
    %53 = vector.extract_strided_slice %1 {offsets = [0, 34], sizes = [8, 256], strides = [1, 1]} : vector<8x290xf32> to vector<8x256xf32>
    %54 = vector.broadcast %26 : vector<1x256xf32> to vector<8x256xf32>
    %55 = arith.mulf %53, %54 : vector<8x256xf32>
    %c64 = arith.constant 64 : index
    %c0_15 = arith.constant 0 : index
    %56 = vector.load %arg7[%c64, %c0_15] : memref<72x256xf32, #tpu.memory_space<vmem>>, vector<8x256xf32>
    tpu.vector_store %arg7[%c64, %c0_15], %55 {strides = array<i32>} : memref<72x256xf32, #tpu.memory_space<vmem>>, vector<8x256xf32>,
    %c0_16 = arith.constant 0 : index
    %c0_17 = arith.constant 0 : index
    %57 = vector.load %arg2[%c0_16, %c0_17] : memref<8x72xf32, #tpu.memory_space<vmem>>, vector<8x72xf32>
    %c0_18 = arith.constant 0 : index
    %c0_19 = arith.constant 0 : index
    %58 = vector.load %arg7[%c0_18, %c0_19] : memref<72x256xf32, #tpu.memory_space<vmem>>, vector<72x256xf32>
    %cst = arith.constant dense<0.000000e+00> : vector<8x256xf32>
    %59 = tpu.matmul %57, %58, %cst {dimension_numbers = #tpu.dot_dimension_numbers<[1], [0], [0], [1], [0, 0, 1, 1], [], []>} : vector<8x72xf32>, vector<72x256xf32>, vector<8x256xf32> -> vector<8x256xf32>
    %c0_20 = arith.constant 0 : index
    %c0_21 = arith.constant 0 : index
    %60 = vector.load %arg3[%c0_20, %c0_21] : memref<8x1xf32, #tpu.memory_space<vmem>>, vector<8x1xf32>
    %61 = vector.broadcast %60 : vector<8x1xf32> to vector<8x256xf32>
    %62 = arith.addf %59, %61 : vector<8x256xf32>
    %cst_22 = arith.constant 0.000000e+00 : f32
    %63 = vector.broadcast %cst_22 : f32 to vector<8x256xf32>
    %64 = arith.maximumf %62, %63 : vector<8x256xf32>
    %cst_23 = arith.constant 0.000000e+00 : f32
    %65 = vector.broadcast %cst_23 : f32 to vector<8x290xf32>
    %c0_24 = arith.constant 0 : index
    %c0_25 = arith.constant 0 : index
    %66 = vector.load %arg8[%c0_24, %c0_25] : memref<8x290xf32, #tpu.memory_space<vmem>>, vector<8x290xf32>
    tpu.vector_store %arg8[%c0_24, %c0_25], %65 {strides = array<i32>} : memref<8x290xf32, #tpu.memory_space<vmem>>, vector<8x290xf32>,
    %c0_26 = arith.constant 0 : index
    %c17 = arith.constant 17 : index
    %67 = vector.load %arg8[%c0_26, %c17] : memref<8x290xf32, #tpu.memory_space<vmem>>, vector<8x256xf32>
    tpu.vector_store %arg8[%c0_26, %c17], %64 {strides = array<i32>} : memref<8x290xf32, #tpu.memory_space<vmem>>, vector<8x256xf32>,
    %c0_27 = arith.constant 0 : index
    %c0_28 = arith.constant 0 : index
    %68 = vector.load %arg8[%c0_27, %c0_28] : memref<8x290xf32, #tpu.memory_space<vmem>>, vector<8x290xf32>
    %69 = vector.extract_strided_slice %68 {offsets = [0, 0], sizes = [8, 256], strides = [1, 1]} : vector<8x290xf32> to vector<8x256xf32>
    %70 = vector.broadcast %22 : vector<1x256xf32> to vector<8x256xf32>
    %71 = arith.mulf %69, %70 : vector<8x256xf32>
    %c0_29 = arith.constant 0 : index
    %c0_30 = arith.constant 0 : index
    %72 = vector.load %arg9[%c0_29, %c0_30] : memref<72x256xf32, #tpu.memory_space<vmem>>, vector<8x256xf32>
    tpu.vector_store %arg9[%c0_29, %c0_30], %71 {strides = array<i32>} : memref<72x256xf32, #tpu.memory_space<vmem>>, vector<8x256xf32>,
    %73 = vector.extract_strided_slice %68 {offsets = [0, 1], sizes = [8, 256], strides = [1, 1]} : vector<8x290xf32> to vector<8x256xf32>
    %c8_31 = arith.constant 8 : index
    %c0_32 = arith.constant 0 : index
    %74 = vector.load %arg9[%c8_31, %c0_32] : memref<72x256xf32, #tpu.memory_space<vmem>>, vector<8x256xf32>
    tpu.vector_store %arg9[%c8_31, %c0_32], %73 {strides = array<i32>} : memref<72x256xf32, #tpu.memory_space<vmem>>, vector<8x256xf32>,
    %75 = vector.extract_strided_slice %68 {offsets = [0, 2], sizes = [8, 256], strides = [1, 1]} : vector<8x290xf32> to vector<8x256xf32>
    %76 = vector.broadcast %26 : vector<1x256xf32> to vector<8x256xf32>
    %77 = arith.mulf %75, %76 : vector<8x256xf32>
    %c16_33 = arith.constant 16 : index
    %c0_34 = arith.constant 0 : index
    %78 = vector.load %arg9[%c16_33, %c0_34] : memref<72x256xf32, #tpu.memory_space<vmem>>, vector<8x256xf32>
    tpu.vector_store %arg9[%c16_33, %c0_34], %77 {strides = array<i32>} : memref<72x256xf32, #tpu.memory_space<vmem>>, vector<8x256xf32>,
    %79 = vector.extract_strided_slice %68 {offsets = [0, 16], sizes = [8, 256], strides = [1, 1]} : vector<8x290xf32> to vector<8x256xf32>
    %80 = vector.broadcast %22 : vector<1x256xf32> to vector<8x256xf32>
    %81 = arith.mulf %79, %80 : vector<8x256xf32>
    %c24_35 = arith.constant 24 : index
    %c0_36 = arith.constant 0 : index
    %82 = vector.load %arg9[%c24_35, %c0_36] : memref<72x256xf32, #tpu.memory_space<vmem>>, vector<8x256xf32>
    tpu.vector_store %arg9[%c24_35, %c0_36], %81 {strides = array<i32>} : memref<72x256xf32, #tpu.memory_space<vmem>>, vector<8x256xf32>,
    %83 = vector.extract_strided_slice %68 {offsets = [0, 17], sizes = [8, 256], strides = [1, 1]} : vector<8x290xf32> to vector<8x256xf32>
    %c32_37 = arith.constant 32 : index
    %c0_38 = arith.constant 0 : index
    %84 = vector.load %arg9[%c32_37, %c0_38] : memref<72x256xf32, #tpu.memory_space<vmem>>, vector<8x256xf32>
    tpu.vector_store %arg9[%c32_37, %c0_38], %83 {strides = array<i32>} : memref<72x256xf32, #tpu.memory_space<vmem>>, vector<8x256xf32>,
    %85 = vector.extract_strided_slice %68 {offsets = [0, 18], sizes = [8, 256], strides = [1, 1]} : vector<8x290xf32> to vector<8x256xf32>
    %86 = vector.broadcast %26 : vector<1x256xf32> to vector<8x256xf32>
    %87 = arith.mulf %85, %86 : vector<8x256xf32>
    %c40_39 = arith.constant 40 : index
    %c0_40 = arith.constant 0 : index
    %88 = vector.load %arg9[%c40_39, %c0_40] : memref<72x256xf32, #tpu.memory_space<vmem>>, vector<8x256xf32>
    tpu.vector_store %arg9[%c40_39, %c0_40], %87 {strides = array<i32>} : memref<72x256xf32, #tpu.memory_space<vmem>>, vector<8x256xf32>,
    %89 = vector.extract_strided_slice %68 {offsets = [0, 32], sizes = [8, 256], strides = [1, 1]} : vector<8x290xf32> to vector<8x256xf32>
    %90 = vector.broadcast %22 : vector<1x256xf32> to vector<8x256xf32>
    %91 = arith.mulf %89, %90 : vector<8x256xf32>
    %c48_41 = arith.constant 48 : index
    %c0_42 = arith.constant 0 : index
    %92 = vector.load %arg9[%c48_41, %c0_42] : memref<72x256xf32, #tpu.memory_space<vmem>>, vector<8x256xf32>
    tpu.vector_store %arg9[%c48_41, %c0_42], %91 {strides = array<i32>} : memref<72x256xf32, #tpu.memory_space<vmem>>, vector<8x256xf32>,
    %93 = vector.extract_strided_slice %68 {offsets = [0, 33], sizes = [8, 256], strides = [1, 1]} : vector<8x290xf32> to vector<8x256xf32>
    %c56_43 = arith.constant 56 : index
    %c0_44 = arith.constant 0 : index
    %94 = vector.load %arg9[%c56_43, %c0_44] : memref<72x256xf32, #tpu.memory_space<vmem>>, vector<8x256xf32>
    tpu.vector_store %arg9[%c56_43, %c0_44], %93 {strides = array<i32>} : memref<72x256xf32, #tpu.memory_space<vmem>>, vector<8x256xf32>,
    %95 = vector.extract_strided_slice %68 {offsets = [0, 34], sizes = [8, 256], strides = [1, 1]} : vector<8x290xf32> to vector<8x256xf32>
    %96 = vector.broadcast %26 : vector<1x256xf32> to vector<8x256xf32>
    %97 = arith.mulf %95, %96 : vector<8x256xf32>
    %c64_45 = arith.constant 64 : index
    %c0_46 = arith.constant 0 : index
    %98 = vector.load %arg9[%c64_45, %c0_46] : memref<72x256xf32, #tpu.memory_space<vmem>>, vector<8x256xf32>
    tpu.vector_store %arg9[%c64_45, %c0_46], %97 {strides = array<i32>} : memref<72x256xf32, #tpu.memory_space<vmem>>, vector<8x256xf32>,
    %c0_47 = arith.constant 0 : index
    %c0_48 = arith.constant 0 : index
    %99 = vector.load %arg4[%c0_47, %c0_48] : memref<8x72xf32, #tpu.memory_space<vmem>>, vector<8x72xf32>
    %c0_49 = arith.constant 0 : index
    %c0_50 = arith.constant 0 : index
    %100 = vector.load %arg9[%c0_49, %c0_50] : memref<72x256xf32, #tpu.memory_space<vmem>>, vector<72x256xf32>
    %cst_51 = arith.constant dense<0.000000e+00> : vector<8x256xf32>
    %101 = tpu.matmul %99, %100, %cst_51 {dimension_numbers = #tpu.dot_dimension_numbers<[1], [0], [0], [1], [0, 0, 1, 1], [], []>} : vector<8x72xf32>, vector<72x256xf32>, vector<8x256xf32> -> vector<8x256xf32>
    %102 = vector.extract_strided_slice %1 {offsets = [0, 17], sizes = [8, 256], strides = [1, 1]} : vector<8x290xf32> to vector<8x256xf32>
    %c0_52 = arith.constant 0 : index
    %c0_53 = arith.constant 0 : index
    %103 = vector.load %arg5[%c0_52, %c0_53] : memref<8x1xf32, #tpu.memory_space<vmem>>, vector<8x1xf32>
    %104 = vector.broadcast %103 : vector<8x1xf32> to vector<8x256xf32>
    %105 = arith.addf %101, %104 : vector<8x256xf32>
    %106 = arith.addf %105, %102 : vector<8x256xf32>
    %cst_54 = arith.constant 0.000000e+00 : f32
    %107 = vector.broadcast %cst_54 : f32 to vector<8x256xf32>
    %108 = arith.maximumf %106, %107 : vector<8x256xf32>
    %c0_55 = arith.constant 0 : index
    %c0_56 = arith.constant 0 : index
    %c0_57 = arith.constant 0 : index
    %109 = vector.load %arg6[%c0_55, %c0_56, %c0_57] : memref<1x8x256xf32, #tpu.memory_space<vmem>>, vector<1x8x256xf32>
    %110 = vector.shape_cast %109 : vector<1x8x256xf32> to vector<8x256xf32>
    %111 = vector.shape_cast %108 : vector<8x256xf32> to vector<1x8x256xf32>
    tpu.vector_store %arg6[%c0_55, %c0_56, %c0_57], %111 {strides = array<i32>} : memref<1x8x256xf32, #tpu.memory_space<vmem>>, vector<1x8x256xf32>,
    return
  }
  func.func @transform_0(%arg0: i32) -> (i32, i32, i32) {
    %c0_i32 = arith.constant 0 : i32
    %c0_i32_0 = arith.constant 0 : i32
    %c0_i32_1 = arith.constant 0 : i32
    return %arg0, %c0_i32, %c0_i32_0 : i32, i32, i32
  }
  func.func @transform_1(%arg0: i32) -> (i32, i32) {
    %c0_i32 = arith.constant 0 : i32
    %c0_i32_0 = arith.constant 0 : i32
    %c0_i32_1 = arith.constant 0 : i32
    return %c0_i32, %c0_i32_0 : i32, i32
  }
  func.func @transform_2(%arg0: i32) -> (i32, i32) {
    %c0_i32 = arith.constant 0 : i32
    %c0_i32_0 = arith.constant 0 : i32
    %c0_i32_1 = arith.constant 0 : i32
    return %c0_i32, %c0_i32_0 : i32, i32
  }
  func.func @transform_3(%arg0: i32) -> (i32, i32) {
    %c0_i32 = arith.constant 0 : i32
    %c0_i32_0 = arith.constant 0 : i32
    %c0_i32_1 = arith.constant 0 : i32
    return %c0_i32, %c0_i32_0 : i32, i32
  }
  func.func @transform_4(%arg0: i32) -> (i32, i32) {
    %c0_i32 = arith.constant 0 : i32
    %c0_i32_0 = arith.constant 0 : i32
    %c0_i32_1 = arith.constant 0 : i32
    return %c0_i32, %c0_i32_0 : i32, i32
  }
  func.func @transform_5(%arg0: i32) -> (i32, i32, i32) {
    %c0_i32 = arith.constant 0 : i32
    %c0_i32_0 = arith.constant 0 : i32
    %c0_i32_1 = arith.constant 0 : i32
    return %arg0, %c0_i32, %c0_i32_0 : i32, i32, i32
  }
}

</mosaic_0001>

<bundles_post_ra>
// kernel: basic_block_forward.1
= control target key start
LH: loop header
LB: loop body
LE: loop exit
PB: predicated region body
PF: predicated region fallthrough
CT: control target
= control target key end

     0   :  { %s1093_s18 = smov 0   ;;  %s1320_s0 = inlined_call_operand.vmem [shape: f32[2,8,290], index: 0, kind: input, shape index: {}]   ;;  %s1321_s1 = inlined_call_operand.vmem [shape: f32[8,72], index: 1, kind: input, shape index: {}]   ;;  %s1322_s2 = inlined_call_operand.vmem [shape: f32[8,1], index: 2, kind: input, shape index: {}]   ;;  %s1323_s3 = inlined_call_operand.vmem [shape: f32[8,72], index: 3, kind: input, shape index: {}]   ;;  %s1324_s4 = inlined_call_operand.vmem [shape: f32[8,1], index: 4, kind: input, shape index: {}]   ;;  %s1325_s5 = inlined_call_operand.vmem [shape: f32[2,8,256], index: 5, kind: output, shape index: {}]  }
   0x1 LB: > { %s873_s19 = sadd.s32 4294967295, %s1045_s18   ;;  %p877_p0 = scmp.ge.s32.totalorder %s1045_s18, 1  ;;  %s1045_s18 = sphi %s1093_s18, %s15_s18  }
   0x2   : > { %p187_p1 = scmp.lt.s32.totalorder %s1045_s18, 3 }
   0x4   : > { %p188_p2 = pnand %p877_p0, %p187_p1 }
   0x5   : > { %v228_v0 = vlaneseq (!%p188_p2)  ;;  %v1047_v1 = vmov (!%p188_p2), 0.0   ;;  %p215_p3 = scmp.lt.s32.totalorder (!%p188_p2), %s873_s19, 1  ;;  %s1048_s24 = smov (!%p188_p2), 2   ;;  %vm433_vm4 = vcmask (!%p188_p2), 277504   ;;  %vm293_vm5 = vcmask (!%p188_p2), 15360  }
   0x6   : > { %191 = sbr.rel (%p188_p2) target bundleno = 988 (0x3dc), region = 40  ;;  %559 = vst [vmem:[#allocation3] sm:$0xff] (!%p188_p2), %v1047_v1  ;;  %550 = vmatprep.mubr.f32.mxu0 (!%p188_p2), %v1047_v1  ;;  %805 = vmatprep.mubr.f32.mxu1 (!%p188_p2), %v1047_v1  ;;  %s1049_s25 = smov (!%p188_p2), 18   ;;  %561 = vst.msk [vmem:[#allocation3 + $0x10] sm:$0xff] (!%p188_p2), %vm433_vm4, %v1047_v1  ;;  %vm323_vm6 = vcmask (!%p188_p2), 130048   ;;  %vm364_vm7 = vcmask (!%p188_p2), 146432  }
   0x7   : > { %v229_v2 = vand.u32 (!%p188_p2), 127, %v228_v0  ;;  %s1050_s26 = smov (!%p188_p2), 16   ;;  %s1051_s27 = smov (!%p188_p2), 32   ;;  %vm392_vm8 = vcmask (!%p188_p2), 261120   ;;  %vm280_vm9 = vcmask (!%p188_p2), 1039360   ;;  %v1060_v63 = vmov (!%p188_p2), 0  }
   0x8   : > { %s1052_s28 = smov (!%p188_p2), 34   ;;  %s1053_s29 = smov (!%p188_p2), 127   ;;  %1002 = vset.pattern.permute.xlu1 (!%p188_p2), %v1060_v63  ;;  %1038 = vset.pattern.permute.xlu0 (!%p188_p2), %v1060_v63  ;;  %vm310_vm10 = vcmask (!%p188_p2), 1031168   ;;  %vm340_vm11 = vcmask (!%p188_p2), 916480   ;;  %vm353_vm12 = vcmask (!%p188_p2), 908288   ;;  %vm381_vm13 = vcmask (!%p188_p2), 900096  }
   0x9   : > { %v230_v3 = vadd.s32 (!%p188_p2), 128, %v229_v2  ;;  %v235_v4 = vand.u32 (!%p188_p2), 15, %v229_v2  ;;  %s1054_s30 = smov (!%p188_p2), 111   ;;  %s1055_s6 = smov (!%p188_p2), 126   ;;  %v476_v2 = vld [vmem:[%s1322_s2] sm:$0xff] (!%p188_p2)  ;;  %vm409_vm14 = vcmask (!%p188_p2), 785408  }
   0xa   : > { %s1056_s7 = smov (!%p188_p2), 112   ;;  %s1057_s8 = smov (!%p188_p2), 110   ;;  %vm422_vm15 = vcmask (!%p188_p2), 777216  }
   0xb   : > { %v242_v5 = vand.u32 (!%p188_p2), 15, %v230_v3  ;;  %vm255_vm0 = vcmp.ne.s32.totalorder (!%p188_p2), %v235_v4, 0  ;;  %vm261_vm1 = vcmp.ne.s32.totalorder (!%p188_p2), %v235_v4, 15  ;;  %s1058_s9 = smov (!%p188_p2), 96   ;;  %s1059_s10 = smov (!%p188_p2), 95  }
   0xc   : > { %v883_v6 = vsel (!%p188_p2), %vm261_vm1, 1.0, %v1047_v1  ;;  %v1104_v8 = vsel (!%p188_p2), %vm255_vm0, 1.0, %v1047_v1  ;;  %s1061_s11 = smov (!%p188_p2), 94   ;;  %vm450_vm0 = vcmask (!%p188_p2), 769024   ;;  %vm482_vm1 = vcmask (!%p188_p2), 588800   ;;  %s1062_s16 = smov (!%p188_p2), 17  }
   0xd   : > { %s1327_s19 = smov (!%p215_p3, %s873_s19), 1  ;;  %vm262_vm2 = vcmp.ne.s32.totalorder %v242_v5, 15  ;;  %vm256_vm3 = vcmp.ne.s32.totalorder %v242_v5, 0 }
   0xe   : > { %s922_s20 = smul.u32 24, %s1327_s19  ;;  %v884_v7 = vsel %vm262_vm2, 1.0, %v1047_v1  ;;  %v1106_v9 = vsel %vm256_vm3, 1.0, %v1047_v1  ;;  %vm573_vm2 = vcmask 1047688   ;;  %vm568_vm3 = vcmask 138240  }
   0xf   : > { %v947_v10 = vpack.i.bf16 %v884_v7, %v883_v6  ;;  %v952_v11 = vpack.i.bf16 %v1106_v9, %v1104_v8 }
  0x10   : > { %s219_s23 = scalar_lea.vmem %s1320_s0, %s922_s20 }
  0x11   : > { %948 = vrot.lane.b32.xlu0 %v947_v10, %s1048_s24  ;;  %958 = vrot.lane.b32.xlu1 %v947_v10, %s1049_s25  ;;  %v1113_v12 = vld [vmem:[%s219_s23 + $0x8] sm:$0xff]  ;;  %v1115_v13 = vld [vmem:[%s219_s23 + $0x10] sm:$0xff] }
  0x12   : > { %v1119_v14 = vpack.i.bf16 %v1115_v13, %v1113_v12  ;;  %v1124_v15 = vld [vmem:[%s219_s23] sm:$0xff]  ;;  %v268_v40 = vmul.f32 %v1106_v9, %v1113_v12  ;;  %s889_s23 = sshll.u32 %s1327_s19, 4 }
  0x13   : > { %v267_v45 = vmul.f32 %v1104_v8, %v1124_v15 }
  0x15   : > { %953 = vrot.lane.b32.xlu0 %v952_v11, %s1050_s26  ;;  %963 = vrot.lane.b32.xlu1 %v952_v11, %s1051_s27  ;;  %s224_s26 = scalar_lea.vmem %s1325_s5, %s889_s23 }
  0x19   : > { %968 = vrot.lane.b32.xlu0 %v947_v10, %s1052_s28  ;;  %973 = vrot.lane.b32.xlu1 %v1119_v14, %s1053_s29 }
  0x1d   : > { %274 = vrot.lane.b32.xlu0 %v1124_v15, %s1053_s29  ;;  %349 = vrot.lane.b32.xlu1 %v1113_v12, %s1054_s30 }
  0x21   : > { %351 = vrot.lane.b32.xlu0 %v1115_v13, %s1054_s30 }
  0x25   : > { %347 = vrot.lane.b32.xlu0 %v1124_v15, %s1054_s30 }
  0x83   : > { %v949_v16 = vpop.permute.xlu0 %948  ;;  %v959_v17 = vpop.permute.xlu1 %958 }
  0x84   : > { %v1134_v18 = vunpack.i.h.bf16 %v949_v16  ;;  %v1136_v19 = vunpack.i.l.bf16 %v949_v16  ;;  %v1138_v20 = vunpack.i.l.bf16 %v959_v17  ;;  %v1146_v23 = vunpack.i.h.bf16 %v959_v17 }
  0x86   : > { %v1142_v21 = vsel %vm293_vm5, %v1136_v19, %v1134_v18  ;;  %v298_v22 = vmul.f32 %v1136_v19, %v1124_v15  ;;  %v369_v28 = vmul.f32 %v1138_v20, %v1124_v15  ;;  %v300_v35 = vmul.f32 %v1134_v18, %v1115_v13 }
  0x87   : > { %v954_v24 = vpop.permute.xlu0 %953  ;;  %v964_v25 = vpop.permute.xlu1 %963  ;;  %v299_v31 = vmul.f32 %v1142_v21, %v1113_v12  ;;  %v1173_v36 = vsel %vm364_vm7, %v1138_v20, %v1146_v23  ;;  %v371_v48 = vmul.f32 %v1146_v23, %v1115_v13 }
  0x88   : > { %v1148_v26 = vunpack.i.h.bf16 %v954_v24  ;;  %v1150_v27 = vunpack.i.l.bf16 %v954_v24  ;;  %304 = vrot.lane.b32.xlu1 %v298_v22, %s1055_s6  ;;  %v1155_v29 = vunpack.i.h.bf16 %v964_v25  ;;  %v1157_v30 = vunpack.i.l.bf16 %v964_v25 }
  0x89   : > { %v977_v46 = vpack.i.bf16 %v300_v35, %v299_v31  ;;  %v370_v47 = vmul.f32 %v1173_v36, %v1113_v12 }
  0x8a   : > { %v1163_v32 = vsel %vm323_vm6, %v1150_v27, %v1148_v26  ;;  %v328_v33 = vmul.f32 %v1150_v27, %v1124_v15  ;;  %v330_v34 = vmul.f32 %v1148_v26, %v1115_v13  ;;  %v1184_v43 = vsel %vm392_vm8, %v1157_v30, %v1155_v29 }
  0x8b   : > { %v329_v37 = vmul.f32 %v1163_v32, %v1113_v12  ;;  %v969_v38 = vpop.permute.xlu0 %968  ;;  %v974_v39 = vpop.permute.xlu1 %973  ;;  %v397_v50 = vmul.f32 %v1157_v30, %v1124_v15  ;;  %v398_v53 = vmul.f32 %v1184_v43, %v1113_v12  ;;  %v399_v54 = vmul.f32 %v1155_v29, %v1115_v13 }
  0x8c   : > { %334 = vrot.lane.b32.xlu0 %v328_v33, %s1056_s7  ;;  %375 = vrot.lane.b32.xlu1 %v369_v28, %s1057_s8  ;;  %v976_v41 = vunpack.i.h.bf16 %v974_v39  ;;  %v975_v42 = vunpack.i.l.bf16 %v974_v39  ;;  %v1202_v56 = vunpack.i.h.bf16 %v969_v38  ;;  %v1204_v57 = vunpack.i.l.bf16 %v969_v38 }
  0x8d   : > { %v982_v44 = vpack.i.bf16 %v330_v34, %v329_v37  ;;  %v987_v59 = vpack.i.bf16 %v371_v48, %v370_v47  ;;  %v997_v60 = vpack.i.bf16 %v399_v54, %v398_v53 }
  0x8e   : > { %v282_v49 = vsel %vm280_vm9, %v975_v42, %v976_v41  ;;  %v1211_v61 = vsel %vm433_vm4, %v1204_v57, %v1202_v56  ;;  %v438_v0 = vmul.f32 %v1204_v57, %v1124_v15  ;;  %v440_v1 = vmul.f32 %v1202_v56, %v1115_v13 }
  0x8f   : > { %v275_v51 = vpop.permute.xlu0 %274  ;;  %v890_v52 = vpack.c.bf16 %v282_v49, %v268_v40  ;;  %v439_v62 = vmul.f32 %v1211_v61, %v1113_v12  ;;  %v350_v4 = vpop.permute.xlu1 %349 }
  0x90   : > { %983 = vrot.lane.b32.xlu0 %v982_v44, %s1056_s7  ;;  %978 = vrot.lane.b32.xlu1 %v977_v46, %s1055_s6  ;;  %v281_v55 = vsel %vm280_vm9, %v275_v51, %v975_v42 }
  0x91   : > { %891 = vmatprep.subr.bf16.mxu0 %v890_v52  ;;  %v892_v58 = vpack.c.bf16 %v281_v55, %v267_v45 }
  0x93   : > { %893 = vmatpush1.bf16.msra.mxu0 %v892_v58  ;;  %v352_v3 = vpop.permute.xlu0 %351 }
  0x94   : > { %403 = vrot.lane.b32.xlu0 %v397_v50, %s1058_s9  ;;  %988 = vrot.lane.b32.xlu1 %v987_v59, %s1057_s8  ;;  %v1235_v38 = vsel %vm353_vm12, %v350_v4, %v352_v3 }
  0x97   : > { %v348_v5 = vpop.permute.xlu0 %347 }
  0x98   : > { %998 = vrot.lane.b32.xlu0 %v997_v60, %s1058_s9  ;;  %993 = vrot.lane.b32.xlu1 %v1119_v14, %s1059_s10  ;;  %v1238_v39 = vsel %vm353_vm12, %v348_v5, %v350_v4 }
  0x9c   : > { %446 = vrot.lane.b32.xlu0 %v439_v62, %s1061_s11  ;;  %416 = vrot.lane.b32.xlu1 %v1124_v15, %s1059_s10 }
  0xa0   : > { %444 = vrot.lane.b32.xlu0 %v438_v0, %s1061_s11  ;;  %448 = vrot.lane.b32.xlu1 %v440_v1, %s1061_s11  ;;  %v457_v1 = vld [vmem:[%s1321_s1] sm:$0xff] }
  0xa4   : > { %479 = vperm.xlu1 %1002, %v476_v2  }
  0xfa   : > { %v305_v6 = vpop.permute.xlu1 %304 }
  0xfe   : > { %v335_v7 = vpop.permute.xlu0 %334  ;;  %v376_v10 = vpop.permute.xlu1 %375 }
 0x102   : > { %v984_v11 = vpop.permute.xlu0 %983  ;;  %v979_v12 = vpop.permute.xlu1 %978 }
 0x103   : > { %v986_v13 = vunpack.i.h.bf16 %v984_v11  ;;  %v985_v14 = vunpack.i.l.bf16 %v984_v11  ;;  %v981_v15 = vunpack.i.h.bf16 %v979_v12  ;;  %v980_v16 = vunpack.i.l.bf16 %v979_v12 }
 0x105   : > { %v312_v17 = vsel %vm310_vm10, %v980_v16, %v981_v15  ;;  %v342_v22 = vsel %vm340_vm11, %v985_v14, %v986_v13  ;;  %v311_v24 = vsel %vm310_vm10, %v305_v6, %v980_v16  ;;  %v341_v25 = vsel %vm340_vm11, %v335_v7, %v985_v14 }
 0x106   : > { %v404_v28 = vpop.permute.xlu0 %403  ;;  %v989_v31 = vpop.permute.xlu1 %988  ;;  %v894_v33 = vpack.c.bf16 %v342_v22, %v312_v17  ;;  %v896_v34 = vpack.c.bf16 %v341_v25, %v311_v24 }
 0x107   : > { %v991_v35 = vunpack.i.h.bf16 %v989_v31  ;;  %v990_v37 = vunpack.i.l.bf16 %v989_v31 }
 0x108   : > { %895 = vmatprep.subr.bf16.mxu0 %v894_v33 }
 0x109   : > { %897 = vmatpush1.bf16.msra.mxu0 %v896_v34  ;;  %v383_v40 = vsel %vm381_vm13, %v990_v37, %v991_v35  ;;  %v382_v41 = vsel %vm381_vm13, %v376_v10, %v990_v37 }
 0x10a   : > { %v999_v42 = vpop.permute.xlu0 %998  ;;  %v994_v44 = vpop.permute.xlu1 %993  ;;  %v898_v45 = vpack.c.bf16 %v383_v40, %v1235_v38  ;;  %v900_v46 = vpack.c.bf16 %v382_v41, %v1238_v39 }
 0x10b   : > { %v1001_v47 = vunpack.i.h.bf16 %v999_v42  ;;  %v1000_v48 = vunpack.i.l.bf16 %v999_v42  ;;  %v996_v49 = vunpack.i.h.bf16 %v994_v44  ;;  %v995_v50 = vunpack.i.l.bf16 %v994_v44 }
 0x10c   : > { %899 = vmatprep.subr.bf16.mxu0 %v898_v45 }
 0x10d   : > { %901 = vmatpush1.bf16.msra.mxu0 %v900_v46  ;;  %v411_v51 = vsel %vm409_vm14, %v1000_v48, %v1001_v47  ;;  %v424_v52 = vsel %vm422_vm15, %v995_v50, %v996_v49  ;;  %v410_v58 = vsel %vm409_vm14, %v404_v28, %v1000_v48 }
 0x10e   : > { %v447_v53 = vpop.permute.xlu0 %446  ;;  %v417_v54 = vpop.permute.xlu1 %416  ;;  %v902_v55 = vpack.c.bf16 %v424_v52, %v411_v51 }
 0x10f   : > { %v423_v59 = vsel %vm422_vm15, %v417_v54, %v995_v50 }
 0x110   : > { %v904_v60 = vpack.c.bf16 %v423_v59, %v410_v58  ;;  %903 = vmatprep.subr.bf16.mxu0 %v902_v55 }
 0x112   : > { %v445_v62 = vpop.permute.xlu0 %444  ;;  %v449_v63 = vpop.permute.xlu1 %448  ;;  %905 = vmatpush1.bf16.msra.mxu0 %v904_v60 }
 0x113   : > { %v452_v0 = vsel %vm450_vm0, %v447_v53, %v449_v63  ;;  %v451_v2 = vsel %vm450_vm0, %v445_v62, %v447_v53 }
 0x114   : > { %502 = vmatprep.subr.mxu0 %v452_v0 }
 0x116   : > { %503 = vmatpush1.msra.mxu0 %v451_v2 }
 0x117   : > { %885 = vmatmul.mubr.msk.f32.vlgmr.msra.gmra.mrb[0].mxu0 %vm482_vm1, %v457_v1 }
 0x123   : > { %v480_v3 = vpop.permute.xlu1 %479 }
 0x1ea   : > { %v552_v4 = vpop.f32.mrb[0].mxu0 }
 0x1eb   : > { %v553_v5 = vadd.f32 %v552_v4, %v480_v3  ;;  %v554_v6 = vpop.f32.mrb[1].mxu0 }
 0x1ec   : > { %v555_v7 = vadd.f32 %v554_v6, %v480_v3 }
 0x1ed   : > { %v557_v10 = vmax.f32 %v553_v5, 0.0 }
 0x1ee   : > { %v558_v11 = vmax.f32 %v555_v7, 0.0 }
 0x1ef   : > { %564 = vrot.lane.b32.xlu0 %v557_v10, %s1062_s16 }
 0x1f0   : > { %566 = vrot.lane.b32.xlu1 %v558_v11, %s1062_s16 }
 0x261   : > { %v565_v12 = vpop.permute.xlu0 %564 }
 0x262   : > { %574 = vst.msk [vmem:[#allocation3] sm:$0xff] %vm573_vm2, %v565_v12  ;;  %v567_v13 = vpop.permute.xlu1 %566 }
 0x263   : > { %v569_v14 = vsel %vm568_vm3, %v565_v12, %v567_v13  ;;  %576 = vst.msk [vmem:[#allocation3 + $0x10] sm:$0xff] %vm568_vm3, %v567_v13 }
 0x264   : > { %v618_v31 = vmul.f32 %v569_v14, %v1163_v32 }
 0x269   : > { %v577_v15 = vld [vmem:[#allocation3] sm:$0xff] }
 0x26a   : > { %635 = vrot.lane.b32.xlu0 %v577_v15, %s1054_s30  ;;  %587 = vrot.lane.b32.xlu1 %v577_v15, %s1053_s29  ;;  %v579_v16 = vld [vmem:[#allocation3 + $0x10] sm:$0xff]  ;;  %v617_v22 = vmul.f32 %v1150_v27, %v577_v15  ;;  %v647_v24 = vmul.f32 %v1138_v20, %v577_v15  ;;  %v599_v25 = vmul.f32 %v1136_v19, %v577_v15 }
 0x26b   : > { %v1003_v17 = vpack.i.bf16 %v579_v16, %v569_v14  ;;  %v619_v28 = vmul.f32 %v1148_v26, %v579_v16  ;;  %v649_v34 = vmul.f32 %v1146_v23, %v579_v16  ;;  %v601_v27 = vmul.f32 %v1134_v18, %v579_v16 }
 0x26c   : > { %v648_v20 = vmul.f32 %v569_v14, %v1173_v36  ;;  %v600_v19 = vmul.f32 %v569_v14, %v1142_v21  ;;  %v665_v32 = vmul.f32 %v1157_v30, %v577_v15  ;;  %v667_v23 = vmul.f32 %v1155_v29, %v579_v16  ;;  %v732_v29 = vld [vmem:[%s1324_s4] sm:$0xff] }
 0x26d   : > { %v1018_v33 = vpack.i.bf16 %v619_v28, %v618_v31  ;;  %v666_v18 = vmul.f32 %v569_v14, %v1184_v43  ;;  %v697_v21 = vmul.f32 %v1202_v56, %v579_v16  ;;  %v696_v36 = vmul.f32 %v569_v14, %v1211_v61 }
 0x26e   : > { %623 = vrot.lane.b32.xlu1 %v617_v22, %s1056_s7  ;;  %1004 = vrot.lane.b32.xlu0 %v1003_v17, %s1053_s29  ;;  %v1023_v26 = vpack.i.bf16 %v649_v34, %v648_v20  ;;  %v1013_v35 = vpack.i.bf16 %v601_v27, %v600_v19  ;;  %v695_v30 = vmul.f32 %v1204_v57, %v577_v15 }
 0x26f   : > { %v1033_v37 = vpack.i.bf16 %v667_v23, %v666_v18  ;;  %v581_v61 = vmul.f32 %v1106_v9, %v569_v14  ;;  %v580_v45 = vmul.f32 %v1104_v8, %v577_v15 }
 0x272   : > { %653 = vrot.lane.b32.xlu1 %v647_v24, %s1057_s8  ;;  %605 = vrot.lane.b32.xlu0 %v599_v25, %s1055_s6 }
 0x276   : > { %1009 = vrot.lane.b32.xlu0 %v1003_v17, %s1054_s30  ;;  %1019 = vrot.lane.b32.xlu1 %v1018_v33, %s1056_s7 }
 0x27a   : > { %1024 = vrot.lane.b32.xlu1 %v1023_v26, %s1057_s8  ;;  %1014 = vrot.lane.b32.xlu0 %v1013_v35, %s1055_s6 }
 0x27e   : > { %1029 = vrot.lane.b32.xlu1 %v1003_v17, %s1059_s10  ;;  %671 = vrot.lane.b32.xlu0 %v665_v32, %s1058_s9 }
 0x282   : > { %683 = vrot.lane.b32.xlu1 %v577_v15, %s1059_s10  ;;  %1034 = vrot.lane.b32.xlu0 %v1033_v37, %s1058_s9  ;;  %v713_v37 = vld [vmem:[%s1323_s3] sm:$0xff] }
 0x286   : > { %705 = vrot.lane.b32.xlu1 %v697_v21, %s1061_s11  ;;  %703 = vrot.lane.b32.xlu0 %v696_v36, %s1061_s11 }
 0x28a   : > { %735 = vperm.xlu1 %1002, %v732_v29   ;;  %701 = vrot.lane.b32.xlu0 %v695_v30, %s1061_s11 }
 0x2dc   : > { %v636_v43 = vpop.permute.xlu0 %635  ;;  %v588_v40 = vpop.permute.xlu1 %587 }
 0x2e0   : > { %v624_v41 = vpop.permute.xlu1 %623  ;;  %v1005_v42 = vpop.permute.xlu0 %1004 }
 0x2e1   : > { %v1007_v56 = vunpack.i.h.bf16 %v1005_v42  ;;  %v1006_v44 = vunpack.i.l.bf16 %v1005_v42 }
 0x2e3   : > { %v594_v46 = vsel %vm280_vm9, %v1006_v44, %v1007_v56  ;;  %v593_v47 = vsel %vm280_vm9, %v588_v40, %v1006_v44 }
 0x2e4   : > { %v654_v48 = vpop.permute.xlu1 %653  ;;  %v606_v49 = vpop.permute.xlu0 %605  ;;  %v906_v57 = vpack.c.bf16 %v594_v46, %v581_v61  ;;  %v908_v50 = vpack.c.bf16 %v593_v47, %v580_v45 }
 0x2e6   : > { %907 = vmatprep.subr.bf16.mxu1 %v906_v57 }
 0x2e7   : > { %909 = vmatpush1.bf16.msra.mxu1 %v908_v50 }
 0x2e8   : > { %v1010_v51 = vpop.permute.xlu0 %1009  ;;  %v1020_v52 = vpop.permute.xlu1 %1019 }
 0x2e9   : > { %v1022_v53 = vunpack.i.h.bf16 %v1020_v52  ;;  %v1021_v54 = vunpack.i.l.bf16 %v1020_v52  ;;  %v1012_v55 = vunpack.i.h.bf16 %v1010_v51  ;;  %v1011_v58 = vunpack.i.l.bf16 %v1010_v51 }
 0x2eb   : > { %v630_v0 = vsel %vm340_vm11, %v1021_v54, %v1022_v53  ;;  %v629_v3 = vsel %vm340_vm11, %v624_v41, %v1021_v54  ;;  %v642_v11 = vsel %vm353_vm12, %v1011_v58, %v1012_v55  ;;  %v641_v22 = vsel %vm353_vm12, %v636_v43, %v1011_v58 }
 0x2ec   : > { %v1025_v59 = vpop.permute.xlu1 %1024  ;;  %v1015_v9 = vpop.permute.xlu0 %1014 }
 0x2ed   : > { %v1027_v60 = vunpack.i.h.bf16 %v1025_v59  ;;  %v1026_v8 = vunpack.i.l.bf16 %v1025_v59  ;;  %v1017_v62 = vunpack.i.h.bf16 %v1015_v9  ;;  %v1016_v63 = vunpack.i.l.bf16 %v1015_v9 }
 0x2ef   : > { %v612_v1 = vsel %vm310_vm10, %v1016_v63, %v1017_v62  ;;  %v611_v2 = vsel %vm310_vm10, %v606_v49, %v1016_v63  ;;  %v660_v4 = vsel %vm381_vm13, %v1026_v8, %v1027_v60  ;;  %v659_v13 = vsel %vm381_vm13, %v654_v48, %v1026_v8 }
 0x2f0   : > { %v1030_v5 = vpop.permute.xlu1 %1029  ;;  %v672_v6 = vpop.permute.xlu0 %671  ;;  %v910_v7 = vpack.c.bf16 %v630_v0, %v612_v1  ;;  %v912_v10 = vpack.c.bf16 %v629_v3, %v611_v2  ;;  %v914_v12 = vpack.c.bf16 %v660_v4, %v642_v11  ;;  %v916_v28 = vpack.c.bf16 %v659_v13, %v641_v22 }
 0x2f1   : > { %v1032_v14 = vunpack.i.h.bf16 %v1030_v5  ;;  %v1031_v15 = vunpack.i.l.bf16 %v1030_v5 }
 0x2f2   : > { %911 = vmatprep.subr.bf16.mxu1 %v910_v7 }
 0x2f3   : > { %913 = vmatpush1.bf16.msra.mxu1 %v912_v10  ;;  %v690_v34 = vsel %vm422_vm15, %v1031_v15, %v1032_v14 }
 0x2f4   : > { %v684_v16 = vpop.permute.xlu1 %683  ;;  %v1035_v17 = vpop.permute.xlu0 %1034  ;;  %915 = vmatprep.subr.bf16.mxu1 %v914_v12 }
 0x2f5   : > { %v1037_v24 = vunpack.i.h.bf16 %v1035_v17  ;;  %v1036_v25 = vunpack.i.l.bf16 %v1035_v17  ;;  %v689_v31 = vsel %vm422_vm15, %v684_v16, %v1031_v15 }
 0x2f7   : > { %917 = vmatpush1.bf16.msra.mxu1 %v916_v28  ;;  %v678_v33 = vsel %vm409_vm14, %v1036_v25, %v1037_v24  ;;  %v677_v27 = vsel %vm409_vm14, %v672_v6, %v1036_v25 }
 0x2f8   : > { %v706_v20 = vpop.permute.xlu1 %705  ;;  %v704_v19 = vpop.permute.xlu0 %703  ;;  %v918_v26 = vpack.c.bf16 %v690_v34, %v678_v33  ;;  %v920_v35 = vpack.c.bf16 %v689_v31, %v677_v27 }
 0x2f9   : > { %v708_v32 = vsel %vm450_vm0, %v704_v19, %v706_v20 }
 0x2fa   : > { %919 = vmatprep.subr.bf16.mxu1 %v918_v26 }
 0x2fb   : > { %921 = vmatpush1.bf16.msra.mxu1 %v920_v35 }
 0x2fc   : > { %v702_v23 = vpop.permute.xlu0 %701  ;;  %757 = vmatprep.subr.mxu1 %v708_v32 }
 0x2fd   : > { %v707_v18 = vsel %vm450_vm0, %v702_v23, %v704_v19 }
 0x2ff   : > { %758 = vmatpush1.msra.mxu1 %v707_v18 }
 0x300   : > { %886 = vmatmul.mubr.msk.f32.vlgmr.msra.gmra.mrb[0].mxu1 %vm482_vm1, %v713_v37 }
 0x309   : > { %v736_v21 = vpop.permute.xlu1 %735 }
 0x3d3   : > { %v807_v36 = vpop.f32.mrb[0].mxu1 }
 0x3d4   : > { %v808_v29 = vadd.f32 %v807_v36, %v736_v21  ;;  %v809_v30 = vpop.f32.mrb[1].mxu1 }
 0x3d5   : > { %v810_v43 = vadd.f32 %v809_v30, %v736_v21 }
 0x3d6   : > { %v812_v40 = vadd.f32 %v808_v29, %v1238_v39 }
 0x3d7   : > { %v813_v41 = vadd.f32 %v810_v43, %v1235_v38 }
 0x3d8   : > { %v814_v42 = vmax.f32 %v812_v40, 0.0 }
 0x3d9   : > { %v815_v56 = vmax.f32 %v813_v41, 0.0 }
 0x3da   : > { %816 = vst [vmem:[%s224_s26] sm:$0xff] %v814_v42 }
 0x3db   : > { %817 = vst [vmem:[%s224_s26 + $0x8] sm:$0xff] %v815_v56 }
 0x3dc PF: > { %s15_s18 = sadd.s32 1, %s1045_s18  }
 0x3dd   : > { %p12_p4 = scmp.ge.s32.totalorder %s15_s18, 4  }
 0x3df   :  { %14 = sbr.rel (!%p12_p4) target bundleno = 1 (0x1), region = 70 }

</bundles_post_ra>
